<compile_context>
chip_gen: v7x
topology: tpu7x:2x2x1
jax: 0.10.0
libtpu: 0.0.40
codegen_flags: <defaults>
</compile_context>

<pallas_src>
import math

import jax
import jax.numpy as jnp
from jax.experimental import pallas as pl
from jax.experimental.pallas import tpu as pltpu


def _causal_self_attention_kernel(x_ref, wv_ref, wproj_ref, o_ref):
    # Cast activations/weights to bf16 at the MXU inputs, accumulate in fp32.
    x = x_ref[...].astype(jnp.bfloat16)                                   # (Tn, E)

    # c_attn, V columns only: with seq_len == 1 the SDPA softmax over the single
    # key position is exactly 1, so the attention output equals V.
    v = jnp.dot(x, wv_ref[...], preferred_element_type=jnp.float32)       # (Tn, E) f32

    # c_proj: output projection (Linear, bias=False), lane-dense output store.
    y = jnp.dot(v.astype(jnp.bfloat16), wproj_ref[...],
                preferred_element_type=jnp.float32)                       # (Tn, E) f32
    o_ref[...] = y.astype(o_ref.dtype)


def _pick_tile_n(n):
    # Prefer large MXU-friendly M tiles, but keep >= 2 grid steps when possible
    # so the "parallel" axis can be sharded across v7x's two TensorCores.
    for cand in (512, 256, 128, 64, 32, 16, 8):
        if n % cand == 0 and n // cand >= 2:
            return cand
    for cand in (512, 256, 128, 64, 32, 16, 8):
        if n % cand == 0:
            return cand
    return n  # full-batch block is always a legal block shape


def causal_self_attention(x, w_attn, w_proj, num_heads, *, tile_n=None):
    """x: (n, E); w_attn: (3E, E) and w_proj: (E, E) in PyTorch (out, in) layout."""
    n, E = x.shape
    assert E % num_heads == 0
    assert w_attn.shape == (3 * E, E) and w_proj.shape == (E, E)

    if tile_n is None:
        tile_n = _pick_tile_n(n)
    assert n % tile_n == 0

    # One-time weight prep (fold into jit constants in real use): keep only the
    # V rows of c_attn, transpose to (in, out) layout, cast to bf16 for the MXU.
    wv_t = w_attn[2 * E:3 * E, :].T.astype(jnp.bfloat16)        # (E, E)
    wproj_t = w_proj.T.astype(jnp.bfloat16)                     # (E, E)

    # VMEM budget: single-copy bf16 weights + double-buffered f32 x/out tiles +
    # headroom for the fp32 intermediates.
    bytes_weights = 2 * E * E * 2
    bytes_io = 2 * (tile_n * E * 4) * 2
    bytes_tmp = 4 * tile_n * E * 4
    vmem_limit = int(min(64 * 1024 * 1024,
                         max(32 * 1024 * 1024,
                             2 * (bytes_weights + bytes_io + bytes_tmp))))

    grid = (n // tile_n,)
    return pl.pallas_call(
        _causal_self_attention_kernel,
        out_shape=jax.ShapeDtypeStruct((n, E), x.dtype),
        grid=grid,
        in_specs=[
            pl.BlockSpec((tile_n, E), lambda i: (i, 0)),                # x tile (lane-dense)
            pl.BlockSpec(memory_space=pltpu.MemorySpace.VMEM),          # Wv: whole array, VMEM-resident
            pl.BlockSpec(memory_space=pltpu.MemorySpace.VMEM),          # Wproj: whole array, VMEM-resident
        ],
        out_specs=pl.BlockSpec((tile_n, E), lambda i: (i, 0)),
        compiler_params=pltpu.CompilerParams(
            # Row-tile axis is independent -> shard across cores (v7x has 2 TCs).
            dimension_semantics=("parallel",),
            vmem_limit_bytes=vmem_limit,
        ),
    )(x, wv_t, wproj_t)


if __name__ == "__main__":
    key = jax.random.PRNGKey(0)
    kx, ka, kp = jax.random.split(key, 3)

    N = 1024                # batch rows; the module views them as (N, seq=1, E)
    NUM_HEADS = 4
    EMBED = 128             # lane-width aligned embed dimension
    HEAD_DIM = EMBED // NUM_HEADS

    x = jax.random.normal(kx, (N, EMBED), dtype=jnp.float32)

    # PyTorch-style Linear init (uniform +-1/sqrt(fan_in)); bias=False per module default.
    bound = 1.0 / math.sqrt(EMBED)
    w_attn = jax.random.uniform(ka, (3 * EMBED, EMBED), jnp.float32, -bound, bound)
    w_proj = jax.random.uniform(kp, (EMBED, EMBED), jnp.float32, -bound, bound)

    out = causal_self_attention(x, w_attn, w_proj, NUM_HEADS)   # auto tile_n: 512, 2 grid steps
    out = jax.block_until_ready(out)
    assert out.shape == (N, EMBED)

    # Plain-JAX fp32 reference mirroring the full PyTorch forward (inference path:
    # dropout=0, is_causal=False; with defaults the training path is identical).
    xr = x.reshape(N, 1, EMBED)
    qkv = xr @ w_attn.T                                                   # (N, 1, 3E)
    q, k, v = jnp.split(qkv, 3, axis=-1)
    q = q.reshape(N, 1, NUM_HEADS, HEAD_DIM).transpose(0, 2, 1, 3)
    k = k.reshape(N, 1, NUM_HEADS, HEAD_DIM).transpose(0, 2, 1, 3)
    v = v.reshape(N, 1, NUM_HEADS, HEAD_DIM).transpose(0, 2, 1, 3)
    s = jnp.einsum("nhqd,nhkd->nhqk", q, k) / math.sqrt(HEAD_DIM)
    p = jax.nn.softmax(s, axis=-1)                                        # == 1 (seq_len 1)
    y = jnp.einsum("nhqk,nhkd->nhqd", p, v)
    y = y.transpose(0, 2, 1, 3).reshape(N, 1, EMBED)
    y_ref = (y @ w_proj.T).reshape(N, EMBED)

    # bf16 MXU inputs with fp32 accumulation vs fp32 reference.
    assert jnp.allclose(out, y_ref, atol=5e-2, rtol=5e-2), \
        float(jnp.max(jnp.abs(out - y_ref)))
    print("KERNEL_OK")
</pallas_src>

<mosaic_0001>
module attributes {stable_mosaic.version = 11 : i64} {
  func.func @_causal_self_attention_kernel(%arg0: i32, %arg1: memref<512x128xf32, #tpu.memory_space<vmem>>, %arg2: memref<128x128xbf16, #tpu.memory_space<vmem>>, %arg3: memref<128x128xbf16, #tpu.memory_space<vmem>>, %arg4: memref<512x128xf32, #tpu.memory_space<vmem>>) attributes {dimension_semantics = [#tpu.dimension_semantics<parallel>], iteration_bounds = array<i64: 2>, scalar_prefetch = 0 : i64, scratch_operands = 0 : i64, tpu.core_type = #tpu.core_type<tc>, window_params = [{transform_indices = @transform_0, window_bounds = array<i64: 512, 128>}, {pipeline_mode = #tpu.pipeline_mode<synchronous>, transform_indices = @transform_1, window_bounds = array<i64: 128, 128>}, {pipeline_mode = #tpu.pipeline_mode<synchronous>, transform_indices = @transform_2, window_bounds = array<i64: 128, 128>}, {transform_indices = @transform_3, window_bounds = array<i64: 512, 128>}]} {
    %c0 = arith.constant 0 : index
    %c0_0 = arith.constant 0 : index
    %0 = vector.load %arg1[%c0, %c0_0] : memref<512x128xf32, #tpu.memory_space<vmem>>, vector<512x128xf32>
    %1 = arith.truncf %0 : vector<512x128xf32> to vector<512x128xbf16>
    %c0_1 = arith.constant 0 : index
    %c0_2 = arith.constant 0 : index
    %2 = vector.load %arg2[%c0_1, %c0_2] : memref<128x128xbf16, #tpu.memory_space<vmem>>, vector<128x128xbf16>
    %cst = arith.constant dense<0.000000e+00> : vector<512x128xf32>
    %3 = tpu.matmul %1, %2, %cst {dimension_numbers = #tpu.dot_dimension_numbers<[1], [0], [0], [1], [0, 0, 1, 1], [], []>} : vector<512x128xbf16>, vector<128x128xbf16>, vector<512x128xf32> -> vector<512x128xf32>
    %4 = arith.truncf %3 : vector<512x128xf32> to vector<512x128xbf16>
    %c0_3 = arith.constant 0 : index
    %c0_4 = arith.constant 0 : index
    %5 = vector.load %arg3[%c0_3, %c0_4] : memref<128x128xbf16, #tpu.memory_space<vmem>>, vector<128x128xbf16>
    %cst_5 = arith.constant dense<0.000000e+00> : vector<512x128xf32>
    %6 = tpu.matmul %4, %5, %cst_5 {dimension_numbers = #tpu.dot_dimension_numbers<[1], [0], [0], [1], [0, 0, 1, 1], [], []>} : vector<512x128xbf16>, vector<128x128xbf16>, vector<512x128xf32> -> vector<512x128xf32>
    %c0_6 = arith.constant 0 : index
    %c0_7 = arith.constant 0 : index
    %7 = vector.load %arg4[%c0_6, %c0_7] : memref<512x128xf32, #tpu.memory_space<vmem>>, vector<512x128xf32>
    tpu.vector_store %arg4[%c0_6, %c0_7], %6 {strides = array<i32>} : memref<512x128xf32, #tpu.memory_space<vmem>>, vector<512x128xf32>,
    return
  }
  func.func @transform_0(%arg0: i32) -> (i32, i32) {
    %c0_i32 = arith.constant 0 : i32
    %c0_i32_0 = arith.constant 0 : i32
    return %arg0, %c0_i32 : i32, i32
  }
  func.func @transform_1(%arg0: i32) -> (i32, i32) {
    %c0_i32 = arith.constant 0 : i32
    %c0_i32_0 = arith.constant 0 : i32
    %c0_i32_1 = arith.constant 0 : i32
    return %c0_i32, %c0_i32_0 : i32, i32
  }
  func.func @transform_2(%arg0: i32) -> (i32, i32) {
    %c0_i32 = arith.constant 0 : i32
    %c0_i32_0 = arith.constant 0 : i32
    %c0_i32_1 = arith.constant 0 : i32
    return %c0_i32, %c0_i32_0 : i32, i32
  }
  func.func @transform_3(%arg0: i32) -> (i32, i32) {
    %c0_i32 = arith.constant 0 : i32
    %c0_i32_0 = arith.constant 0 : i32
    return %arg0, %c0_i32 : i32, i32
  }
}

</mosaic_0001>

<bundles_post_ra>
// kernel: tpu_custom_call.1
= control target key start
LH: loop header
LB: loop body
LE: loop exit
PB: predicated region body
PF: predicated region fallthrough
CT: control target
= control target key end

     0   :  { %8 = vsyncpa [#allocation3], 0  ;;  %s2149_s0 = inlined_call_operand.hbm [shape: f32[1024,128], index: 0, kind: input, shape index: {}]   ;;  %s2150_s1 = inlined_call_operand.hbm [shape: bf16[128,128], index: 1, kind: input, shape index: {}]   ;;  %s2151_s2 = inlined_call_operand.hbm [shape: bf16[128,128], index: 2, kind: input, shape index: {}]   ;;  %s2152_s3 = inlined_call_operand.hbm [shape: f32[1024,128], index: 3, kind: output, shape index: {}]  }
   0x1   :  { %10 = vsyncpa [#allocation3 + $0x1], 0 }
   0x2   :  { %11 = vsyncpa [#allocation6], 0 }
   0x3   :  { %12 = vsyncpa [#allocation4], 0 }
   0x4   :  { %14 = vsyncpa [#allocation4 + $0x1], 0  ;;  %s1778_s12 = smov 0   ;;  %s1780_s13 = smov 0  }
   0x5   :  { %s1782_s14 = smov 0   ;;  %s1784_s15 = smov 0  }
   0x6 LB: > { %s1799_s16 = sadd.s32 4294967295, %s1746_s15   ;;  %s1225_s17 = sadd.s32 4294967294, %s1746_s15   ;;  %s1746_s15 = sphi %s1784_s15, %s2172_s15   ;;  %s1742_s14 = sphi %s1782_s14, %s2171_s14   ;;  %s1738_s13 = sphi %s1780_s13, %s2170_s13   ;;  %s1734_s12 = sphi %s1778_s12, %s2169_s12  }
   0x7   : > { %p40_p0 = scmp.ne.s32.totalorder %s1738_s13, %s1734_s12  ;;  %p2153_p1 = scmp.eq.s32.totalorder %s1799_s16, 0 }
   0x8   : > { %p112_p3 = scmp.eq.s32.totalorder %s1225_s17, 1  ;;  %p1226_p5 = scmp.ge.s32.totalorder %s1746_s15, 1 }
   0x9   : > { %p1808_p4 = por %p2153_p1, %p40_p0  ;;  %p119_p7 = scmp.lt.s32.totalorder %s1746_s15, 3 }
   0xa   : > { %p1813_p6 = por %p112_p3, %p40_p0  ;;  %s1748_s21 = smov [#allocation5]  }
   0xb   : > { %s2156_s18 = scalar_select %p1808_p4, 1, 0 }
   0xc   : > { %s2157_s19 = scalar_select %p1813_p6, 1, 0 }
   0xd   : > { %p1818_p8 = pnand %p1226_p5, %p119_p7  ;;  %s131_s22 = sshll.u32 %s1748_s21, 4  ;;  %s1822_s22 = int_to_ptr.vmem [resolvable:$true] %s131_s22 }
   0xe   : > { %s1749_s24 = smov [#allocation7]   ;;  %s1590_s28 = scalar_lea.hbm %s2150_s1, 1024 }
   0xf   : > { %p1513_p9 = pneg %p1818_p8  ;;  %s144_s25 = sshll.u32 %s1749_s24, 4  ;;  %s1833_s25 = int_to_ptr.vmem [resolvable:$true] %s144_s25 }
  0x10   : > { %p1591_p12 = scmp.ne.s32.totalorder %s2150_s1, %s1590_s28  ;;  %p1597_p5 = scmp.lt.u32.totalorder %s1590_s28, %s2150_s1 }
  0x11   : > { %p1829_p11 = pnand %p1513_p9, %p2153_p1 }
  0x13   : > { %p1592_p13 = pneg %p1829_p11 }
  0x15   : > { %p1593_p0 = pnand %p1592_p13, %p1591_p12 }
  0x17   : > { %p1594_p3 = pneg %p1593_p0 }
  0x19   : > { %p1599_p7 = pnand %p1597_p5, %p1594_p3 }
  0x1b   : > { %1602 = shalt.err (!%p1599_p7)
}
  0x1c   : > { %s1603_s6 = scalar_lea.vmem %s1822_s22, 1024  ;;  %p1611_p2 = scmp.lt.s32.totalorder %s1822_s22, %s1822_s22 }
  0x1d   : > { %p1604_p9 = scmp.ne.s32.totalorder %s1822_s22, %s1603_s6  ;;  %p1612_p12 = scmp.lt.s32.totalorder %s1603_s6, %s1603_s6 }
  0x1f   : > { %p1606_p10 = pnand %p1604_p9, %p1592_p13  ;;  %p1613_p0 = por %p1612_p12, %p1611_p2 }
  0x21   : > { %p1607_p1 = pneg %p1606_p10 }
  0x23   : > { %p1614_p6 = pnand %p1613_p0, %p1607_p1 }
  0x25   : > { %1617 = shalt.err (!%p1614_p6)
}
  0x26   : > { %s1750_s7 = smov 64   ;;  %s1751_s8 = smov 4  }
  0x27   : > { %1516 = dma.hbm_to_vmem [thread:$0]  (!%p1829_p11), %s2150_s1, 1024, %s1822_s22, [#allocation6], %s1750_s7, %s1750_s7, %s1751_s8  }
  0x28   : > { %s1618_s21 = scalar_lea.hbm %s2151_s2, 1024 }
  0x29   : > { %p1619_p2 = scmp.ne.s32.totalorder %s2151_s2, %s1618_s21  ;;  %p1625_p10 = scmp.lt.u32.totalorder %s1618_s21, %s2151_s2 }
  0x2b   : > { %p1621_p1 = pnand %p1619_p2, %p1592_p13 }
  0x2d   : > { %p1622_p6 = pneg %p1621_p1 }
  0x2f   : > { %p1627_p3 = pnand %p1625_p10, %p1622_p6 }
  0x31   : > { %1630 = shalt.err (!%p1627_p3)
}
  0x32   : > { %s1631_s22 = scalar_lea.vmem %s1833_s25, 1024  ;;  %p1639_p12 = scmp.lt.s32.totalorder %s1833_s25, %s1833_s25 }
  0x33   : > { %p1632_p5 = scmp.ne.s32.totalorder %s1833_s25, %s1631_s22  ;;  %p1640_p0 = scmp.lt.s32.totalorder %s1631_s22, %s1631_s22 }
  0x35   : > { %p1634_p7 = pnand %p1632_p5, %p1592_p13  ;;  %p1641_p2 = por %p1640_p0, %p1639_p12 }
  0x37   : > { %p1635_p9 = pneg %p1634_p7 }
  0x39   : > { %p1642_p1 = pnand %p1641_p2, %p1635_p9 }
  0x3b   : > { %1645 = shalt.err (!%p1642_p1)
}
  0x3c   : > { %1519 = dma.hbm_to_vmem [thread:$0]  (!%p1829_p11), %s2151_s2, 1024, %s1833_s25, [#allocation6], %s1750_s7, %s1750_s7, %s1751_s8  }
  0x3d   : > { %s1888_s4 = sadd.s32 1, %s1746_s15   ;;  %s27_s23 = sadd.s32 1, %s1742_s14 }
  0x3e   : > { %s24_s5 = ssub.s32 %s1746_s15, %s1888_s4  ;;  %p34_p13 = scmp.ne.s32.totalorder %s1742_s14, %s1738_s13 }
  0x3f   : > { %p25_p6 = scmp.eq.s32.totalorder %s24_s5, 0  ;;  %p35_p10 = scmp.eq.s32.totalorder %s1746_s15, 0 }
  0x40   : > { %p2160_p3 = scmp.eq.s32.totalorder %s1799_s16, 1  ;;  %p1530_p7 = scmp.lt.s32.totalorder %s1746_s15, 2 }
  0x41   : > { %s1904_s9 = scalar_select %p25_p6, %s1742_s14, %s27_s23  }
  0x42   : > { %p1898_p5 = por %p2160_p3, %p34_p13  ;;  %p36_p9 = por %p35_p10, %p34_p13 }
  0x43   : > { %s158_s10 = sand.u32 1, %s1742_s14   ;;  %s1259_s25 = sshll.u32 %s1746_s15, 13 }
  0x44   : > { %s2161_s6 = scalar_select %p1898_p5, 1, 0 }
  0x45   : > { %s1230_s11 = sshll.u32 %s158_s10, 9  ;;  %s1911_s17 = scalar_lea.hbm %s2149_s0, %s1259_s25 }
  0x46   : > { %s162_s21 = scalar_lea.vmem [#allocation2], %s1230_s11  ;;  %p1915_p11 = pnand %p1530_p7, %p36_p9 }
  0x47   : > { %s169_s24 = sshll.u32 %s162_s21, 4  ;;  %s1919_s27 = scalar_lea.sflag [#allocation3], %s158_s10  ;;  %s1913_s24 = int_to_ptr.vmem [resolvable:$true] %s169_s24 }
  0x48   : > { %s1646_s28 = scalar_lea.hbm %s1911_s17, 8192  ;;  %p1648_p0 = pneg %p1915_p11 }
  0x49   : > { %p1647_p12 = scmp.ne.s32.totalorder %s1911_s17, %s1646_s28  ;;  %s1651_s30 = scalar_lea.hbm %s2149_s0, 16384 }
  0x4a   : > { %p1652_p13 = scmp.lt.u32.totalorder %s1911_s17, %s2149_s0  ;;  %p1653_p6 = scmp.lt.u32.totalorder %s1651_s30, %s1646_s28 }
  0x4b   : > { %p1649_p2 = pnand %p1648_p0, %p1647_p12  ;;  %p1655_p3 = scmp.lt.u32.totalorder %s1646_s28, %s1911_s17 }
  0x4c   : > { %p1654_p10 = por %p1653_p6, %p1652_p13 }
  0x4d   : > { %p1650_p1 = pneg %p1649_p2 }
  0x4e   : > { %p1656_p7 = por %p1655_p3, %p1654_p10 }
  0x50   : > { %p1657_p9 = pnand %p1656_p7, %p1650_p1 }
  0x52   : > { %1660 = shalt.err (!%p1657_p9)
}
  0x53   : > { %s1661_s10 = scalar_lea.vmem %s1913_s24, 8192  ;;  %s1752_s11 = smov [#allocation2]  }
  0x54   : > { %p1662_p12 = scmp.ne.s32.totalorder %s1913_s24, %s1661_s10  ;;  %s1666_s25 = sshll.u32 %s1752_s11, 4  ;;  %s1667_s25 = int_to_ptr.vmem [resolvable:$false] %s1666_s25 }
  0x55   : > { %s1668_s7 = scalar_lea.vmem %s1667_s25, 16384  ;;  %p1669_p4 = scmp.lt.s32.totalorder %s1913_s24, %s1667_s25 }
  0x56   : > { %p1664_p2 = pnand %p1662_p12, %p1648_p0  ;;  %p1670_p13 = scmp.lt.s32.totalorder %s1668_s7, %s1661_s10 }
  0x58   : > { %p1665_p5 = pneg %p1664_p2  ;;  %p1671_p6 = por %p1670_p13, %p1669_p4 }
  0x5a   : > { %p1672_p10 = pnand %p1671_p6, %p1665_p5 }
  0x5c   : > { %1675 = shalt.err (!%p1672_p10)
}
  0x5d   : > { %s1753_s8 = smov 128   ;;  %s1754_s21 = smov 8  }
  0x5e   : > { %1523 = dma.hbm_to_vmem [thread:$0]  (!%p1915_p11), %s1911_s17, 8192, %s1913_s24, %s1919_s27, %s1753_s8, %s1753_s8, %s1754_s21  }
  0x5f   : > { %181 = sbr.rel (%p1818_p8) target bundleno = 707 (0x2c3), region = 32  ;;  %s1950_s28 = sand.u32 (!%p1818_p8), 1, %s1738_s13  }
  0x60   : > { %s1234_s22 = sshll.u32 (!%p1818_p8), %s1950_s28, 9  ;;  %s184_s29 = scalar_lea.sflag (!%p1818_p8), [#allocation3], %s1950_s28 }
  0x61   : > { %s1956_s30 = scalar_lea.vmem (!%p1818_p8), [#allocation2], %s1234_s22  ;;  %p2163_p4 = scmp.ne.s32.totalorder (!%p1818_p8), %s2156_s18, 0 }
  0x66   : > { %1721 = dma.done.wait (%p2163_p4), %s184_s29, 8192  }
  0x67   : > { %1723 = vsyncadd (%p2163_p4), %s184_s29, 4294959104  ;;  %p2164_p5 = scmp.eq.s32.totalorder %s1799_s16, 0 }
  0x69   : > { %1725 = dma.done.wait (%p2164_p5), [#allocation6], 2048   ;;  %p2165_p8 = pmov %p2164_p5 }
  0x6a   : > { %v1574_v0 = vld [vmem:[#allocation5] sm:$0xff]   ;;  %v1575_v1 = vld [vmem:[#allocation5 + $0x8] sm:$0xff]   ;;  %v1576_v2 = vld [vmem:[#allocation5 + $0x10] sm:$0xff]   ;;  %s2032_s18 = scalar_lea.vmem [#allocation8], %s1234_s22  ;;  %s1260_s20 = sshll.u32 %s1799_s16, 13 }
  0x6b   : > { %1727 = vsyncadd (%p2165_p8), [#allocation6], 4294965248  ;;  %1341 = vmatprep.subr.bf16.mxu0 %v1574_v0  ;;  %v1577_v3 = vld [vmem:[#allocation5 + $0x18] sm:$0xff]   ;;  %v221_v4 = vld [vmem:[%s1956_s30] sm:$0xff]  ;;  %s1133_s17 = sshll.u32 %s2032_s18, 4  ;;  %s2100_s27 = scalar_lea.hbm %s2152_s3, %s1260_s20  ;;  %s2102_s17 = int_to_ptr.vmem [resolvable:$true] %s1133_s17 }
  0x6c   : > { %1342 = vmatpush3.bf16.msra.mxu0 %v1574_v0  ;;  %v222_v5 = vld [vmem:[%s1956_s30 + $0x8] sm:$0xff]  ;;  %v1578_v7 = vld [vmem:[#allocation5 + $0x20] sm:$0xff]   ;;  %v1580_v9 = vld [vmem:[#allocation5 + $0x30] sm:$0xff]   ;;  %s1120_s16 = scalar_lea.sflag [#allocation4], %s1950_s28  ;;  %s1676_s23 = scalar_lea.vmem %s2102_s17, 8192 }
  0x6d   : > { %1343 = vmatprep.subr.bf16.mxu0 %v1575_v1  ;;  %v285_v6 = vpack.c.bf16 %v222_v5, %v221_v4  ;;  %v1579_v8 = vld [vmem:[#allocation5 + $0x28] sm:$0xff]   ;;  %v1581_v10 = vld [vmem:[#allocation5 + $0x38] sm:$0xff]   ;;  %v223_v11 = vld [vmem:[%s1956_s30 + $0x10] sm:$0xff]  ;;  %p1677_p11 = scmp.ne.s32.totalorder %s2102_s17, %s1676_s23  ;;  %p2166_p0 = scmp.ne.s32.totalorder %s2161_s6, 0 }
  0x6e   : > { %v224_v12 = vld [vmem:[%s1956_s30 + $0x18] sm:$0xff]  ;;  %v225_v13 = vld [vmem:[%s1956_s30 + $0x20] sm:$0xff]  ;;  %v226_v14 = vld [vmem:[%s1956_s30 + $0x28] sm:$0xff]  ;;  %s1755_s5 = smov [#allocation8]  }
  0x6f   : > { %1357 = vmatprep.mubr.bf16.mxu0 %v285_v6  ;;  %v286_v15 = vpack.c.bf16 %v224_v12, %v223_v11  ;;  %v1582_v16 = vld [vmem:[#allocation7] sm:$0xff]   ;;  %v287_v17 = vpack.c.bf16 %v226_v14, %v225_v13  ;;  %v1583_v18 = vld [vmem:[#allocation7 + $0x8] sm:$0xff]   ;;  %v227_v19 = vld [vmem:[%s1956_s30 + $0x30] sm:$0xff]  ;;  %p1678_p1 = pnand %p1677_p11, %p2166_p0  ;;  %s1680_s10 = sshll.u32 %s1755_s5, 4  ;;  %s1681_s10 = int_to_ptr.vmem [resolvable:$false] %s1680_s10 }
  0x70   : > { %1344 = vmatpush3.bf16.msra.mxu0 %v1575_v1  ;;  %1421 = vmatprep.subr.bf16.mxu1 %v1582_v16  ;;  %v228_v20 = vld [vmem:[%s1956_s30 + $0x38] sm:$0xff]  ;;  %v1584_v21 = vld [vmem:[#allocation7 + $0x10] sm:$0xff]   ;;  %v229_v22 = vld [vmem:[%s1956_s30 + $0x40] sm:$0xff]  ;;  %s1682_s11 = scalar_lea.vmem %s1681_s10, 16384  ;;  %p1683_p7 = scmp.lt.s32.totalorder %s2102_s17, %s1681_s10 }
  0x71   : > { %1345 = vmatprep.subr.bf16.mxu0 %v1576_v2  ;;  %1422 = vmatpush3.bf16.msra.mxu1 %v1582_v16  ;;  %v230_v23 = vld [vmem:[%s1956_s30 + $0x48] sm:$0xff]  ;;  %v288_v24 = vpack.c.bf16 %v228_v20, %v227_v19  ;;  %v1585_v25 = vld [vmem:[#allocation7 + $0x18] sm:$0xff]   ;;  %v1586_v27 = vld [vmem:[#allocation7 + $0x20] sm:$0xff]   ;;  %p1679_p3 = pneg %p1678_p1  ;;  %p1684_p9 = scmp.lt.s32.totalorder %s1682_s11, %s1676_s23 }
  0x72   : > { %1423 = vmatprep.subr.bf16.mxu1 %v1583_v18  ;;  %v289_v26 = vpack.c.bf16 %v230_v23, %v229_v22  ;;  %v231_v28 = vld [vmem:[%s1956_s30 + $0x50] sm:$0xff]  ;;  %v232_v29 = vld [vmem:[%s1956_s30 + $0x58] sm:$0xff]  ;;  %v233_v30 = vld [vmem:[%s1956_s30 + $0x60] sm:$0xff] }
  0x73   : > { %v234_v31 = vld [vmem:[%s1956_s30 + $0x68] sm:$0xff]  ;;  %v290_v32 = vpack.c.bf16 %v232_v29, %v231_v28  ;;  %v1588_v35 = vld [vmem:[#allocation7 + $0x30] sm:$0xff]   ;;  %v236_v37 = vld [vmem:[%s1956_s30 + $0x78] sm:$0xff]  ;;  %p1685_p12 = por %p1684_p9, %p1683_p7 }
  0x74   : > { %1346 = vmatpush3.bf16.msra.mxu0 %v1576_v2  ;;  %v1587_v33 = vld [vmem:[#allocation7 + $0x28] sm:$0xff]   ;;  %v291_v34 = vpack.c.bf16 %v234_v31, %v233_v30  ;;  %v235_v36 = vld [vmem:[%s1956_s30 + $0x70] sm:$0xff]  ;;  %v237_v38 = vld [vmem:[%s1956_s30 + $0x80] sm:$0xff] }
  0x75   : > { %1347 = vmatprep.subr.bf16.mxu0 %v1577_v3  ;;  %1424 = vmatpush3.bf16.msra.mxu1 %v1583_v18  ;;  %v238_v39 = vld [vmem:[%s1956_s30 + $0x88] sm:$0xff]  ;;  %v292_v40 = vpack.c.bf16 %v236_v37, %v235_v36  ;;  %v239_v42 = vld [vmem:[%s1956_s30 + $0x90] sm:$0xff]  ;;  %v240_v43 = vld [vmem:[%s1956_s30 + $0x98] sm:$0xff]  ;;  %p1686_p2 = pnand %p1685_p12, %p1679_p3 }
  0x76   : > { %1425 = vmatprep.subr.bf16.mxu1 %v1584_v21  ;;  %v293_v41 = vpack.c.bf16 %v238_v39, %v237_v38  ;;  %v241_v44 = vld [vmem:[%s1956_s30 + $0xa0] sm:$0xff]  ;;  %v242_v45 = vld [vmem:[%s1956_s30 + $0xa8] sm:$0xff]  ;;  %v294_v46 = vpack.c.bf16 %v240_v43, %v239_v42  ;;  %v243_v48 = vld [vmem:[%s1956_s30 + $0xb0] sm:$0xff] }
  0x77   : > { %v295_v47 = vpack.c.bf16 %v242_v45, %v241_v44  ;;  %v244_v49 = vld [vmem:[%s1956_s30 + $0xb8] sm:$0xff]  ;;  %v245_v50 = vld [vmem:[%s1956_s30 + $0xc0] sm:$0xff]  ;;  %v246_v51 = vld [vmem:[%s1956_s30 + $0xc8] sm:$0xff] }
  0x78   : > { %1348 = vmatpush3.bf16.msra.mxu0 %v1577_v3  ;;  %v296_v52 = vpack.c.bf16 %v244_v49, %v243_v48  ;;  %v297_v53 = vpack.c.bf16 %v246_v51, %v245_v50  ;;  %v247_v54 = vld [vmem:[%s1956_s30 + $0xd0] sm:$0xff]  ;;  %v248_v55 = vld [vmem:[%s1956_s30 + $0xd8] sm:$0xff]  ;;  %v249_v56 = vld [vmem:[%s1956_s30 + $0xe0] sm:$0xff] }
  0x79   : > { %1349 = vmatprep.subr.bf16.mxu0 %v1578_v7  ;;  %1426 = vmatpush3.bf16.msra.mxu1 %v1584_v21  ;;  %v250_v57 = vld [vmem:[%s1956_s30 + $0xe8] sm:$0xff]  ;;  %v298_v58 = vpack.c.bf16 %v248_v55, %v247_v54  ;;  %v251_v60 = vld [vmem:[%s1956_s30 + $0xf0] sm:$0xff]  ;;  %v252_v61 = vld [vmem:[%s1956_s30 + $0xf8] sm:$0xff] }
  0x7a   : > { %1427 = vmatprep.subr.bf16.mxu1 %v1585_v25  ;;  %v299_v59 = vpack.c.bf16 %v250_v57, %v249_v56  ;;  %v253_v62 = vld [vmem:[%s1956_s30 + $0x100] sm:$0xff]  ;;  %v254_v63 = vld [vmem:[%s1956_s30 + $0x108] sm:$0xff]  ;;  %v300_v0 = vpack.c.bf16 %v252_v61, %v251_v60  ;;  %v255_v2 = vld [vmem:[%s1956_s30 + $0x110] sm:$0xff] }
  0x7b   : > { %v301_v1 = vpack.c.bf16 %v254_v63, %v253_v62  ;;  %v256_v3 = vld [vmem:[%s1956_s30 + $0x118] sm:$0xff]  ;;  %v257_v4 = vld [vmem:[%s1956_s30 + $0x120] sm:$0xff]  ;;  %v258_v5 = vld [vmem:[%s1956_s30 + $0x128] sm:$0xff] }
  0x7c   : > { %1350 = vmatpush3.bf16.msra.mxu0 %v1578_v7  ;;  %v302_v6 = vpack.c.bf16 %v256_v3, %v255_v2  ;;  %v303_v7 = vpack.c.bf16 %v258_v5, %v257_v4  ;;  %v262_v11 = vld [vmem:[%s1956_s30 + $0x148] sm:$0xff]  ;;  %v263_v14 = vld [vmem:[%s1956_s30 + $0x150] sm:$0xff]  ;;  %v265_v16 = vld [vmem:[%s1956_s30 + $0x160] sm:$0xff] }
  0x7d   : > { %1351 = vmatprep.subr.bf16.mxu0 %v1579_v8  ;;  %1428 = vmatpush3.bf16.msra.mxu1 %v1585_v25  ;;  %v267_v20 = vld [vmem:[%s1956_s30 + $0x170] sm:$0xff]  ;;  %v268_v21 = vld [vmem:[%s1956_s30 + $0x178] sm:$0xff]  ;;  %v269_v22 = vld [vmem:[%s1956_s30 + $0x180] sm:$0xff] }
  0x7e   : > { %1429 = vmatprep.subr.bf16.mxu1 %v1586_v27  ;;  %v270_v23 = vld [vmem:[%s1956_s30 + $0x188] sm:$0xff]  ;;  %v1589_v25 = vld [vmem:[#allocation7 + $0x38] sm:$0xff]   ;;  %v273_v29 = vld [vmem:[%s1956_s30 + $0x1a0] sm:$0xff] }
  0x7f   : > { %v272_v28 = vld [vmem:[%s1956_s30 + $0x198] sm:$0xff]  ;;  %v274_v30 = vld [vmem:[%s1956_s30 + $0x1a8] sm:$0xff]  ;;  %v279_v39 = vld [vmem:[%s1956_s30 + $0x1d0] sm:$0xff] }
  0x80   : > { %1352 = vmatpush3.bf16.msra.mxu0 %v1579_v8  ;;  %v259_v8 = vld [vmem:[%s1956_s30 + $0x130] sm:$0xff]  ;;  %v278_v36 = vld [vmem:[%s1956_s30 + $0x1c8] sm:$0xff] }
  0x81   : > { %1353 = vmatprep.subr.bf16.mxu0 %v1580_v9  ;;  %1430 = vmatpush3.bf16.msra.mxu1 %v1586_v27  ;;  %v271_v27 = vld [vmem:[%s1956_s30 + $0x190] sm:$0xff]  ;;  %v282_v42 = vld [vmem:[%s1956_s30 + $0x1e8] sm:$0xff] }
  0x82   : > { %1431 = vmatprep.subr.bf16.mxu1 %v1587_v33  ;;  %v310_v31 = vpack.c.bf16 %v272_v28, %v271_v27  ;;  %v283_v45 = vld [vmem:[%s1956_s30 + $0x1f0] sm:$0xff] }
  0x84   : > { %1354 = vmatpush3.bf16.msra.mxu0 %v1580_v9  ;;  %v260_v9 = vld [vmem:[%s1956_s30 + $0x138] sm:$0xff] }
  0x85   : > { %1355 = vmatprep.subr.bf16.mxu0 %v1581_v10  ;;  %1432 = vmatpush3.bf16.msra.mxu1 %v1587_v33  ;;  %v304_v12 = vpack.c.bf16 %v260_v9, %v259_v8  ;;  %v275_v33 = vld [vmem:[%s1956_s30 + $0x1b0] sm:$0xff] }
  0x86   : > { %1433 = vmatprep.subr.bf16.mxu1 %v1588_v35 }
  0x88   : > { %1356 = vmatpush3.bf16.msra.mxu0 %v1581_v10  ;;  %v261_v10 = vld [vmem:[%s1956_s30 + $0x140] sm:$0xff] }
  0x89   : > { %1434 = vmatpush3.bf16.msra.mxu1 %v1588_v35  ;;  %v305_v13 = vpack.c.bf16 %v262_v11, %v261_v10  ;;  %v277_v35 = vld [vmem:[%s1956_s30 + $0x1c0] sm:$0xff] }
  0x8a   : > { %1435 = vmatprep.subr.bf16.mxu1 %v1589_v25  ;;  %v313_v38 = vpack.c.bf16 %v278_v36, %v277_v35 }
  0x8b   : > { %1358 = vmatmul.mubr.bf16.vlgmr.msra.gmra.mrb[0].mxu0 %v286_v15  ;;  %v264_v15 = vld [vmem:[%s1956_s30 + $0x158] sm:$0xff] }
  0x8c   : > { %1361 = vmatprep.mubr.bf16.mxu0 %v287_v17  ;;  %v266_v17 = vld [vmem:[%s1956_s30 + $0x168] sm:$0xff]  ;;  %v306_v18 = vpack.c.bf16 %v264_v15, %v263_v14 }
  0x8d   : > { %v307_v19 = vpack.c.bf16 %v266_v17, %v265_v16  ;;  %1436 = vmatpush3.bf16.msra.mxu1 %v1589_v25 }
  0x93   : > { %1362 = vmatmul.mubr.bf16.gmra.mrb[4].mxu0 %v288_v24  ;;  %v308_v24 = vpack.c.bf16 %v268_v21, %v267_v20 }
  0x94   : > { %1365 = vmatprep.mubr.bf16.mxu0 %v289_v26  ;;  %v309_v26 = vpack.c.bf16 %v270_v23, %v269_v22 }
  0x9b   : > { %1366 = vmatmul.mubr.bf16.gmra.mrb[8].mxu0 %v290_v32  ;;  %v311_v32 = vpack.c.bf16 %v274_v30, %v273_v29 }
  0x9c   : > { %1369 = vmatprep.mubr.bf16.mxu0 %v291_v34  ;;  %v276_v34 = vld [vmem:[%s1956_s30 + $0x1b8] sm:$0xff] }
  0x9d   : > { %v312_v37 = vpack.c.bf16 %v276_v34, %v275_v33 }
  0xa3   : > { %1370 = vmatmul.mubr.bf16.gmra.mrb[12].mxu0 %v292_v40  ;;  %v280_v40 = vld [vmem:[%s1956_s30 + $0x1d8] sm:$0xff] }
  0xa4   : > { %1373 = vmatprep.mubr.bf16.mxu0 %v293_v41  ;;  %v281_v41 = vld [vmem:[%s1956_s30 + $0x1e0] sm:$0xff]  ;;  %v314_v43 = vpack.c.bf16 %v280_v40, %v279_v39 }
  0xa5   : > { %v315_v44 = vpack.c.bf16 %v282_v42, %v281_v41 }
  0xab   : > { %1374 = vmatmul.mubr.bf16.gmra.mrb[16].mxu0 %v294_v46  ;;  %v284_v46 = vld [vmem:[%s1956_s30 + $0x1f8] sm:$0xff] }
  0xac   : > { %1377 = vmatprep.mubr.bf16.mxu0 %v295_v47  ;;  %v316_v47 = vpack.c.bf16 %v284_v46, %v283_v45 }
  0xb3   : > { %1378 = vmatmul.mubr.bf16.gmra.mrb[20].mxu0 %v296_v52 }
  0xb4   : > { %1381 = vmatprep.mubr.bf16.mxu0 %v297_v53 }
  0xbb   : > { %1382 = vmatmul.mubr.bf16.gmra.mrb[24].mxu0 %v298_v58 }
  0xbc   : > { %1385 = vmatprep.mubr.bf16.mxu0 %v299_v59 }
  0xc3   : > { %1386 = vmatmul.mubr.bf16.gmra.mrb[28].mxu0 %v300_v0 }
  0xc4   : > { %1389 = vmatprep.mubr.bf16.mxu0 %v301_v1 }
  0xcb   : > { %1390 = vmatmul.mubr.bf16.gmra.mrb[32].mxu0 %v302_v6 }
  0xcc   : > { %1393 = vmatprep.mubr.bf16.mxu0 %v303_v7 }
  0xd3   : > { %1394 = vmatmul.mubr.bf16.gmra.mrb[36].mxu0 %v304_v12 }
  0xd4   : > { %1397 = vmatprep.mubr.bf16.mxu0 %v305_v13 }
  0xdb   : > { %1398 = vmatmul.mubr.bf16.gmra.mrb[40].mxu0 %v306_v18 }
  0xdc   : > { %1401 = vmatprep.mubr.bf16.mxu0 %v307_v19 }
  0xe3   : > { %1402 = vmatmul.mubr.bf16.gmra.mrb[44].mxu0 %v308_v24 }
  0xe4   : > { %1405 = vmatprep.mubr.bf16.mxu0 %v309_v26 }
  0xeb   : > { %1406 = vmatmul.mubr.bf16.gmra.mrb[48].mxu0 %v310_v31 }
  0xec   : > { %1409 = vmatprep.mubr.bf16.mxu0 %v311_v32 }
  0xf3   : > { %1410 = vmatmul.mubr.bf16.gmra.mrb[52].mxu0 %v312_v37 }
  0xf4   : > { %1413 = vmatprep.mubr.bf16.mxu0 %v313_v38 }
  0xfb   : > { %1414 = vmatmul.mubr.bf16.gmra.mrb[56].mxu0 %v314_v43 }
  0xfc   : > { %1417 = vmatprep.mubr.bf16.mxu0 %v315_v44 }
 0x103   : > { %1418 = vmatmul.mubr.bf16.gmra.mrb[60].mxu0 %v316_v47 }
 0x15e   : > { %v1359_v48 = vpop.f32.mrb[0].mxu0 }
 0x15f   : > { %v415_v49 = vpop.f32.mrb[1].mxu0 }
 0x160   : > { %v1360_v50 = vpop.f32.mrb[2].mxu0 }
 0x161   : > { %v671_v51 = vpack.c.bf16 %v1360_v50, %v1359_v48  ;;  %v418_v52 = vpop.f32.mrb[3].mxu0 }
 0x162   : > { %v670_v53 = vpack.c.bf16 %v418_v52, %v415_v49 }
 0x164   : > { %1437 = vmatprep.mubr.bf16.mxu1 %v670_v53 }
 0x165   : > { %1438 = vmatmul.mubr.bf16.vlgmr.msra.gmra.mrb[0].mxu1 %v671_v51 }
 0x166   : > { %v1363_v54 = vpop.f32.mrb[4].mxu0 }
 0x167   : > { %v431_v55 = vpop.f32.mrb[5].mxu0 }
 0x168   : > { %v1364_v56 = vpop.f32.mrb[6].mxu0 }
 0x169   : > { %v673_v57 = vpack.c.bf16 %v1364_v56, %v1363_v54  ;;  %v434_v58 = vpop.f32.mrb[7].mxu0 }
 0x16a   : > { %v672_v59 = vpack.c.bf16 %v434_v58, %v431_v55 }
 0x16c   : > { %1441 = vmatprep.mubr.bf16.mxu1 %v672_v59 }
 0x16d   : > { %1442 = vmatmul.mubr.bf16.gmra.mrb[4].mxu1 %v673_v57 }
 0x16e   : > { %v1367_v60 = vpop.f32.mrb[8].mxu0 }
 0x16f   : > { %v447_v61 = vpop.f32.mrb[9].mxu0 }
 0x170   : > { %v1368_v62 = vpop.f32.mrb[10].mxu0 }
 0x171   : > { %v675_v63 = vpack.c.bf16 %v1368_v62, %v1367_v60  ;;  %v450_v0 = vpop.f32.mrb[11].mxu0 }
 0x172   : > { %v674_v1 = vpack.c.bf16 %v450_v0, %v447_v61 }
 0x174   : > { %1445 = vmatprep.mubr.bf16.mxu1 %v674_v1 }
 0x175   : > { %1446 = vmatmul.mubr.bf16.gmra.mrb[8].mxu1 %v675_v63 }
 0x176   : > { %v1371_v2 = vpop.f32.mrb[12].mxu0 }
 0x177   : > { %v463_v3 = vpop.f32.mrb[13].mxu0 }
 0x178   : > { %v1372_v4 = vpop.f32.mrb[14].mxu0 }
 0x179   : > { %v677_v5 = vpack.c.bf16 %v1372_v4, %v1371_v2  ;;  %v466_v6 = vpop.f32.mrb[15].mxu0 }
 0x17a   : > { %v676_v7 = vpack.c.bf16 %v466_v6, %v463_v3 }
 0x17c   : > { %1449 = vmatprep.mubr.bf16.mxu1 %v676_v7 }
 0x17d   : > { %1450 = vmatmul.mubr.bf16.gmra.mrb[12].mxu1 %v677_v5 }
 0x17e   : > { %v1375_v8 = vpop.f32.mrb[16].mxu0 }
 0x17f   : > { %v479_v9 = vpop.f32.mrb[17].mxu0 }
 0x180   : > { %v1376_v10 = vpop.f32.mrb[18].mxu0 }
 0x181   : > { %v679_v11 = vpack.c.bf16 %v1376_v10, %v1375_v8  ;;  %v482_v12 = vpop.f32.mrb[19].mxu0 }
 0x182   : > { %v678_v13 = vpack.c.bf16 %v482_v12, %v479_v9 }
 0x184   : > { %1453 = vmatprep.mubr.bf16.mxu1 %v678_v13 }
 0x185   : > { %1454 = vmatmul.mubr.bf16.gmra.mrb[16].mxu1 %v679_v11 }
 0x186   : > { %v1379_v14 = vpop.f32.mrb[20].mxu0 }
 0x187   : > { %v495_v15 = vpop.f32.mrb[21].mxu0 }
 0x188   : > { %v1380_v16 = vpop.f32.mrb[22].mxu0 }
 0x189   : > { %v681_v17 = vpack.c.bf16 %v1380_v16, %v1379_v14  ;;  %v498_v18 = vpop.f32.mrb[23].mxu0 }
 0x18a   : > { %v680_v19 = vpack.c.bf16 %v498_v18, %v495_v15 }
 0x18c   : > { %1457 = vmatprep.mubr.bf16.mxu1 %v680_v19 }
 0x18d   : > { %1458 = vmatmul.mubr.bf16.gmra.mrb[20].mxu1 %v681_v17 }
 0x18e   : > { %v1383_v20 = vpop.f32.mrb[24].mxu0 }
 0x18f   : > { %v511_v21 = vpop.f32.mrb[25].mxu0 }
 0x190   : > { %v1384_v22 = vpop.f32.mrb[26].mxu0 }
 0x191   : > { %v683_v23 = vpack.c.bf16 %v1384_v22, %v1383_v20  ;;  %v514_v24 = vpop.f32.mrb[27].mxu0 }
 0x192   : > { %v682_v25 = vpack.c.bf16 %v514_v24, %v511_v21 }
 0x194   : > { %1461 = vmatprep.mubr.bf16.mxu1 %v682_v25 }
 0x195   : > { %1462 = vmatmul.mubr.bf16.gmra.mrb[24].mxu1 %v683_v23 }
 0x196   : > { %v1387_v26 = vpop.f32.mrb[28].mxu0 }
 0x197   : > { %v527_v27 = vpop.f32.mrb[29].mxu0 }
 0x198   : > { %v1388_v28 = vpop.f32.mrb[30].mxu0 }
 0x199   : > { %v685_v29 = vpack.c.bf16 %v1388_v28, %v1387_v26  ;;  %v530_v30 = vpop.f32.mrb[31].mxu0 }
 0x19a   : > { %v684_v31 = vpack.c.bf16 %v530_v30, %v527_v27 }
 0x19c   : > { %1465 = vmatprep.mubr.bf16.mxu1 %v684_v31 }
 0x19d   : > { %1466 = vmatmul.mubr.bf16.gmra.mrb[28].mxu1 %v685_v29 }
 0x19e   : > { %v1391_v32 = vpop.f32.mrb[32].mxu0 }
 0x19f   : > { %v543_v33 = vpop.f32.mrb[33].mxu0 }
 0x1a0   : > { %v1392_v34 = vpop.f32.mrb[34].mxu0 }
 0x1a1   : > { %v687_v35 = vpack.c.bf16 %v1392_v34, %v1391_v32  ;;  %v546_v36 = vpop.f32.mrb[35].mxu0 }
 0x1a2   : > { %v686_v37 = vpack.c.bf16 %v546_v36, %v543_v33 }
 0x1a4   : > { %1469 = vmatprep.mubr.bf16.mxu1 %v686_v37 }
 0x1a5   : > { %1470 = vmatmul.mubr.bf16.gmra.mrb[32].mxu1 %v687_v35 }
 0x1a6   : > { %v1395_v38 = vpop.f32.mrb[36].mxu0 }
 0x1a7   : > { %v559_v39 = vpop.f32.mrb[37].mxu0 }
 0x1a8   : > { %v1396_v40 = vpop.f32.mrb[38].mxu0 }
 0x1a9   : > { %v689_v41 = vpack.c.bf16 %v1396_v40, %v1395_v38  ;;  %v562_v42 = vpop.f32.mrb[39].mxu0 }
 0x1aa   : > { %v688_v43 = vpack.c.bf16 %v562_v42, %v559_v39 }
 0x1ac   : > { %1473 = vmatprep.mubr.bf16.mxu1 %v688_v43 }
 0x1ad   : > { %1474 = vmatmul.mubr.bf16.gmra.mrb[36].mxu1 %v689_v41 }
 0x1ae   : > { %v1399_v44 = vpop.f32.mrb[40].mxu0 }
 0x1af   : > { %v575_v45 = vpop.f32.mrb[41].mxu0 }
 0x1b0   : > { %v1400_v46 = vpop.f32.mrb[42].mxu0 }
 0x1b1   : > { %v691_v47 = vpack.c.bf16 %v1400_v46, %v1399_v44  ;;  %v578_v48 = vpop.f32.mrb[43].mxu0 }
 0x1b2   : > { %v690_v49 = vpack.c.bf16 %v578_v48, %v575_v45 }
 0x1b4   : > { %1477 = vmatprep.mubr.bf16.mxu1 %v690_v49 }
 0x1b5   : > { %1478 = vmatmul.mubr.bf16.gmra.mrb[40].mxu1 %v691_v47 }
 0x1b6   : > { %v1403_v50 = vpop.f32.mrb[44].mxu0 }
 0x1b7   : > { %v591_v51 = vpop.f32.mrb[45].mxu0 }
 0x1b8   : > { %v1404_v52 = vpop.f32.mrb[46].mxu0 }
 0x1b9   : > { %v693_v53 = vpack.c.bf16 %v1404_v52, %v1403_v50  ;;  %v594_v54 = vpop.f32.mrb[47].mxu0 }
 0x1ba   : > { %v692_v55 = vpack.c.bf16 %v594_v54, %v591_v51 }
 0x1bc   : > { %1481 = vmatprep.mubr.bf16.mxu1 %v692_v55 }
 0x1bd   : > { %1482 = vmatmul.mubr.bf16.gmra.mrb[44].mxu1 %v693_v53 }
 0x1be   : > { %v1407_v56 = vpop.f32.mrb[48].mxu0 }
 0x1bf   : > { %v607_v57 = vpop.f32.mrb[49].mxu0 }
 0x1c0   : > { %v1408_v58 = vpop.f32.mrb[50].mxu0 }
 0x1c1   : > { %v695_v59 = vpack.c.bf16 %v1408_v58, %v1407_v56  ;;  %v610_v60 = vpop.f32.mrb[51].mxu0 }
 0x1c2   : > { %v694_v61 = vpack.c.bf16 %v610_v60, %v607_v57 }
 0x1c4   : > { %1485 = vmatprep.mubr.bf16.mxu1 %v694_v61 }
 0x1c5   : > { %1486 = vmatmul.mubr.bf16.gmra.mrb[48].mxu1 %v695_v59 }
 0x1c6   : > { %v1411_v62 = vpop.f32.mrb[52].mxu0 }
 0x1c7   : > { %v623_v63 = vpop.f32.mrb[53].mxu0 }
 0x1c8   : > { %v1412_v0 = vpop.f32.mrb[54].mxu0 }
 0x1c9   : > { %v697_v1 = vpack.c.bf16 %v1412_v0, %v1411_v62  ;;  %v626_v2 = vpop.f32.mrb[55].mxu0 }
 0x1ca   : > { %v696_v3 = vpack.c.bf16 %v626_v2, %v623_v63 }
 0x1cc   : > { %1489 = vmatprep.mubr.bf16.mxu1 %v696_v3 }
 0x1cd   : > { %1490 = vmatmul.mubr.bf16.gmra.mrb[52].mxu1 %v697_v1 }
 0x1ce   : > { %v1415_v4 = vpop.f32.mrb[56].mxu0 }
 0x1cf   : > { %v639_v5 = vpop.f32.mrb[57].mxu0 }
 0x1d0   : > { %v1416_v6 = vpop.f32.mrb[58].mxu0 }
 0x1d1   : > { %v699_v7 = vpack.c.bf16 %v1416_v6, %v1415_v4  ;;  %v642_v8 = vpop.f32.mrb[59].mxu0 }
 0x1d2   : > { %v698_v9 = vpack.c.bf16 %v642_v8, %v639_v5 }
 0x1d4   : > { %1493 = vmatprep.mubr.bf16.mxu1 %v698_v9 }
 0x1d5   : > { %1494 = vmatmul.mubr.bf16.gmra.mrb[56].mxu1 %v699_v7 }
 0x1d6   : > { %v1419_v10 = vpop.f32.mrb[60].mxu0 }
 0x1d7   : > { %v655_v11 = vpop.f32.mrb[61].mxu0 }
 0x1d8   : > { %v1420_v12 = vpop.f32.mrb[62].mxu0 }
 0x1d9   : > { %v701_v13 = vpack.c.bf16 %v1420_v12, %v1419_v10  ;;  %v658_v14 = vpop.f32.mrb[63].mxu0 }
 0x1da   : > { %v700_v15 = vpack.c.bf16 %v658_v14, %v655_v11 }
 0x1dc   : > { %1497 = vmatprep.mubr.bf16.mxu1 %v700_v15 }
 0x1dd   : > { %1498 = vmatmul.mubr.bf16.gmra.mrb[60].mxu1 %v701_v13 }
 0x238   : > { %v1439_v16 = vpop.f32.mrb[0].mxu1 }
 0x239   : > { %1057 = vst [vmem:[%s2032_s18 + $0x10] sm:$0xff] %v1439_v16  ;;  %v800_v17 = vpop.f32.mrb[1].mxu1 }
 0x23a   : > { %1055 = vst [vmem:[%s2032_s18] sm:$0xff] %v800_v17  ;;  %v1440_v18 = vpop.f32.mrb[2].mxu1 }
 0x23b   : > { %1058 = vst [vmem:[%s2032_s18 + $0x18] sm:$0xff] %v1440_v18  ;;  %v803_v19 = vpop.f32.mrb[3].mxu1 }
 0x23c   : > { %1056 = vst [vmem:[%s2032_s18 + $0x8] sm:$0xff] %v803_v19 }
 0x240   : > { %v1443_v20 = vpop.f32.mrb[4].mxu1 }
 0x241   : > { %1061 = vst [vmem:[%s2032_s18 + $0x30] sm:$0xff] %v1443_v20  ;;  %v816_v21 = vpop.f32.mrb[5].mxu1 }
 0x242   : > { %1059 = vst [vmem:[%s2032_s18 + $0x20] sm:$0xff] %v816_v21  ;;  %v1444_v22 = vpop.f32.mrb[6].mxu1 }
 0x243   : > { %1062 = vst [vmem:[%s2032_s18 + $0x38] sm:$0xff] %v1444_v22  ;;  %v819_v23 = vpop.f32.mrb[7].mxu1 }
 0x244   : > { %1060 = vst [vmem:[%s2032_s18 + $0x28] sm:$0xff] %v819_v23 }
 0x248   : > { %v1447_v24 = vpop.f32.mrb[8].mxu1 }
 0x249   : > { %1065 = vst [vmem:[%s2032_s18 + $0x50] sm:$0xff] %v1447_v24  ;;  %v832_v25 = vpop.f32.mrb[9].mxu1 }
 0x24a   : > { %1063 = vst [vmem:[%s2032_s18 + $0x40] sm:$0xff] %v832_v25  ;;  %v1448_v26 = vpop.f32.mrb[10].mxu1 }
 0x24b   : > { %1066 = vst [vmem:[%s2032_s18 + $0x58] sm:$0xff] %v1448_v26  ;;  %v835_v27 = vpop.f32.mrb[11].mxu1 }
 0x24c   : > { %1064 = vst [vmem:[%s2032_s18 + $0x48] sm:$0xff] %v835_v27 }
 0x250   : > { %v1451_v28 = vpop.f32.mrb[12].mxu1 }
 0x251   : > { %1069 = vst [vmem:[%s2032_s18 + $0x70] sm:$0xff] %v1451_v28  ;;  %v848_v29 = vpop.f32.mrb[13].mxu1 }
 0x252   : > { %1067 = vst [vmem:[%s2032_s18 + $0x60] sm:$0xff] %v848_v29  ;;  %v1452_v30 = vpop.f32.mrb[14].mxu1 }
 0x253   : > { %1070 = vst [vmem:[%s2032_s18 + $0x78] sm:$0xff] %v1452_v30  ;;  %v851_v31 = vpop.f32.mrb[15].mxu1 }
 0x254   : > { %1068 = vst [vmem:[%s2032_s18 + $0x68] sm:$0xff] %v851_v31 }
 0x258   : > { %v1455_v32 = vpop.f32.mrb[16].mxu1 }
 0x259   : > { %1073 = vst [vmem:[%s2032_s18 + $0x90] sm:$0xff] %v1455_v32  ;;  %v864_v33 = vpop.f32.mrb[17].mxu1 }
 0x25a   : > { %1071 = vst [vmem:[%s2032_s18 + $0x80] sm:$0xff] %v864_v33  ;;  %v1456_v34 = vpop.f32.mrb[18].mxu1 }
 0x25b   : > { %1074 = vst [vmem:[%s2032_s18 + $0x98] sm:$0xff] %v1456_v34  ;;  %v867_v35 = vpop.f32.mrb[19].mxu1 }
 0x25c   : > { %1072 = vst [vmem:[%s2032_s18 + $0x88] sm:$0xff] %v867_v35 }
 0x260   : > { %v1459_v36 = vpop.f32.mrb[20].mxu1 }
 0x261   : > { %1077 = vst [vmem:[%s2032_s18 + $0xb0] sm:$0xff] %v1459_v36  ;;  %v880_v37 = vpop.f32.mrb[21].mxu1 }
 0x262   : > { %1075 = vst [vmem:[%s2032_s18 + $0xa0] sm:$0xff] %v880_v37  ;;  %v1460_v38 = vpop.f32.mrb[22].mxu1 }
 0x263   : > { %1078 = vst [vmem:[%s2032_s18 + $0xb8] sm:$0xff] %v1460_v38  ;;  %v883_v39 = vpop.f32.mrb[23].mxu1 }
 0x264   : > { %1076 = vst [vmem:[%s2032_s18 + $0xa8] sm:$0xff] %v883_v39 }
 0x268   : > { %v1463_v40 = vpop.f32.mrb[24].mxu1 }
 0x269   : > { %1081 = vst [vmem:[%s2032_s18 + $0xd0] sm:$0xff] %v1463_v40  ;;  %v896_v41 = vpop.f32.mrb[25].mxu1 }
 0x26a   : > { %1079 = vst [vmem:[%s2032_s18 + $0xc0] sm:$0xff] %v896_v41  ;;  %v1464_v42 = vpop.f32.mrb[26].mxu1 }
 0x26b   : > { %1082 = vst [vmem:[%s2032_s18 + $0xd8] sm:$0xff] %v1464_v42  ;;  %v899_v43 = vpop.f32.mrb[27].mxu1 }
 0x26c   : > { %1080 = vst [vmem:[%s2032_s18 + $0xc8] sm:$0xff] %v899_v43 }
 0x270   : > { %v1467_v44 = vpop.f32.mrb[28].mxu1 }
 0x271   : > { %1085 = vst [vmem:[%s2032_s18 + $0xf0] sm:$0xff] %v1467_v44  ;;  %v912_v45 = vpop.f32.mrb[29].mxu1 }
 0x272   : > { %1083 = vst [vmem:[%s2032_s18 + $0xe0] sm:$0xff] %v912_v45  ;;  %v1468_v46 = vpop.f32.mrb[30].mxu1 }
 0x273   : > { %1086 = vst [vmem:[%s2032_s18 + $0xf8] sm:$0xff] %v1468_v46  ;;  %v915_v47 = vpop.f32.mrb[31].mxu1 }
 0x274   : > { %1084 = vst [vmem:[%s2032_s18 + $0xe8] sm:$0xff] %v915_v47 }
 0x278   : > { %v1471_v48 = vpop.f32.mrb[32].mxu1 }
 0x279   : > { %1089 = vst [vmem:[%s2032_s18 + $0x110] sm:$0xff] %v1471_v48  ;;  %v928_v49 = vpop.f32.mrb[33].mxu1 }
 0x27a   : > { %1087 = vst [vmem:[%s2032_s18 + $0x100] sm:$0xff] %v928_v49  ;;  %v1472_v50 = vpop.f32.mrb[34].mxu1 }
 0x27b   : > { %1090 = vst [vmem:[%s2032_s18 + $0x118] sm:$0xff] %v1472_v50  ;;  %v931_v51 = vpop.f32.mrb[35].mxu1 }
 0x27c   : > { %1088 = vst [vmem:[%s2032_s18 + $0x108] sm:$0xff] %v931_v51 }
 0x280   : > { %v1475_v52 = vpop.f32.mrb[36].mxu1 }
 0x281   : > { %1093 = vst [vmem:[%s2032_s18 + $0x130] sm:$0xff] %v1475_v52  ;;  %v944_v53 = vpop.f32.mrb[37].mxu1 }
 0x282   : > { %1091 = vst [vmem:[%s2032_s18 + $0x120] sm:$0xff] %v944_v53  ;;  %v1476_v54 = vpop.f32.mrb[38].mxu1 }
 0x283   : > { %1094 = vst [vmem:[%s2032_s18 + $0x138] sm:$0xff] %v1476_v54  ;;  %v947_v55 = vpop.f32.mrb[39].mxu1 }
 0x284   : > { %1092 = vst [vmem:[%s2032_s18 + $0x128] sm:$0xff] %v947_v55 }
 0x288   : > { %v1479_v56 = vpop.f32.mrb[40].mxu1 }
 0x289   : > { %1097 = vst [vmem:[%s2032_s18 + $0x150] sm:$0xff] %v1479_v56  ;;  %v960_v57 = vpop.f32.mrb[41].mxu1 }
 0x28a   : > { %1095 = vst [vmem:[%s2032_s18 + $0x140] sm:$0xff] %v960_v57  ;;  %v1480_v58 = vpop.f32.mrb[42].mxu1 }
 0x28b   : > { %1098 = vst [vmem:[%s2032_s18 + $0x158] sm:$0xff] %v1480_v58  ;;  %v963_v59 = vpop.f32.mrb[43].mxu1 }
 0x28c   : > { %1096 = vst [vmem:[%s2032_s18 + $0x148] sm:$0xff] %v963_v59 }
 0x290   : > { %v1483_v60 = vpop.f32.mrb[44].mxu1 }
 0x291   : > { %1101 = vst [vmem:[%s2032_s18 + $0x170] sm:$0xff] %v1483_v60  ;;  %v976_v61 = vpop.f32.mrb[45].mxu1 }
 0x292   : > { %1099 = vst [vmem:[%s2032_s18 + $0x160] sm:$0xff] %v976_v61  ;;  %v1484_v62 = vpop.f32.mrb[46].mxu1 }
 0x293   : > { %1102 = vst [vmem:[%s2032_s18 + $0x178] sm:$0xff] %v1484_v62  ;;  %v979_v63 = vpop.f32.mrb[47].mxu1 }
 0x294   : > { %1100 = vst [vmem:[%s2032_s18 + $0x168] sm:$0xff] %v979_v63 }
 0x298   : > { %v1487_v0 = vpop.f32.mrb[48].mxu1 }
 0x299   : > { %1105 = vst [vmem:[%s2032_s18 + $0x190] sm:$0xff] %v1487_v0  ;;  %v992_v1 = vpop.f32.mrb[49].mxu1 }
 0x29a   : > { %1103 = vst [vmem:[%s2032_s18 + $0x180] sm:$0xff] %v992_v1  ;;  %v1488_v2 = vpop.f32.mrb[50].mxu1 }
 0x29b   : > { %1106 = vst [vmem:[%s2032_s18 + $0x198] sm:$0xff] %v1488_v2  ;;  %v995_v3 = vpop.f32.mrb[51].mxu1 }
 0x29c   : > { %1104 = vst [vmem:[%s2032_s18 + $0x188] sm:$0xff] %v995_v3 }
 0x2a0   : > { %v1491_v4 = vpop.f32.mrb[52].mxu1 }
 0x2a1   : > { %1109 = vst [vmem:[%s2032_s18 + $0x1b0] sm:$0xff] %v1491_v4  ;;  %v1008_v5 = vpop.f32.mrb[53].mxu1 }
 0x2a2   : > { %1107 = vst [vmem:[%s2032_s18 + $0x1a0] sm:$0xff] %v1008_v5  ;;  %v1492_v6 = vpop.f32.mrb[54].mxu1 }
 0x2a3   : > { %1110 = vst [vmem:[%s2032_s18 + $0x1b8] sm:$0xff] %v1492_v6  ;;  %v1011_v7 = vpop.f32.mrb[55].mxu1 }
 0x2a4   : > { %1108 = vst [vmem:[%s2032_s18 + $0x1a8] sm:$0xff] %v1011_v7 }
 0x2a8   : > { %v1495_v8 = vpop.f32.mrb[56].mxu1 }
 0x2a9   : > { %1113 = vst [vmem:[%s2032_s18 + $0x1d0] sm:$0xff] %v1495_v8  ;;  %v1024_v9 = vpop.f32.mrb[57].mxu1 }
 0x2aa   : > { %1111 = vst [vmem:[%s2032_s18 + $0x1c0] sm:$0xff] %v1024_v9  ;;  %v1496_v10 = vpop.f32.mrb[58].mxu1 }
 0x2ab   : > { %1114 = vst [vmem:[%s2032_s18 + $0x1d8] sm:$0xff] %v1496_v10  ;;  %v1027_v11 = vpop.f32.mrb[59].mxu1 }
 0x2ac   : > { %1112 = vst [vmem:[%s2032_s18 + $0x1c8] sm:$0xff] %v1027_v11 }
 0x2b0   : > { %v1499_v12 = vpop.f32.mrb[60].mxu1 }
 0x2b1   : > { %1117 = vst [vmem:[%s2032_s18 + $0x1f0] sm:$0xff] %v1499_v12  ;;  %v1040_v13 = vpop.f32.mrb[61].mxu1 }
 0x2b2   : > { %1115 = vst [vmem:[%s2032_s18 + $0x1e0] sm:$0xff] %v1040_v13  ;;  %v1500_v14 = vpop.f32.mrb[62].mxu1 }
 0x2b3   : > { %1118 = vst [vmem:[%s2032_s18 + $0x1f8] sm:$0xff] %v1500_v14  ;;  %v1043_v15 = vpop.f32.mrb[63].mxu1 }
 0x2b4   : > { %1116 = vst [vmem:[%s2032_s18 + $0x1e8] sm:$0xff] %v1043_v15 }
 0x2b5   : > { %1689 = shalt.err (!%p1686_p2)
}
 0x2b6   : > { %s1690_s25 = scalar_lea.hbm %s2100_s27, 8192  ;;  %s1694_s21 = scalar_lea.hbm %s2152_s3, 16384 }
 0x2b7   : > { %p1691_p13 = scmp.ne.s32.totalorder %s2100_s27, %s1690_s25  ;;  %p1695_p4 = scmp.lt.u32.totalorder %s2100_s27, %s2152_s3 }
 0x2b8   : > { %p1696_p5 = scmp.lt.u32.totalorder %s1694_s21, %s1690_s25  ;;  %p1698_p11 = scmp.lt.u32.totalorder %s1690_s25, %s2100_s27 }
 0x2b9   : > { %p1692_p6 = pnand %p1691_p13, %p2166_p0 }
 0x2ba   : > { %p1697_p8 = por %p1696_p5, %p1695_p4 }
 0x2bb   : > { %p1693_p10 = pneg %p1692_p6 }
 0x2bc   : > { %p1699_p1 = por %p1698_p11, %p1697_p8 }
 0x2be   : > { %p1700_p3 = pnand %p1699_p1, %p1693_p10 }
 0x2c0   : > { %1703 = shalt.err (!%p1700_p3)
}
 0x2c1   : > { %s1756_s30 = smov 128   ;;  %s1757_s18 = smov 8  }
 0x2c2   : > { %1511 = dma.vmem_to_hbm [thread:$0]  (%p2166_p0), %s2102_s17, 8192, %s2100_s27, %s1120_s16, %s1756_s30, %s1756_s30, %s1757_s18  }
 0x2c3 PF: > { %s1148_s20 = sand.u32 1, %s1734_s12   ;;  %p2167_p7 = scmp.ne.s32.totalorder %s2157_s19, 0 }
 0x2c4   : > { %p2168_p9 = scmp.ge.s32.totalorder %s1746_s15, 2  ;;  %s1149_s24 = scalar_lea.sflag [#allocation4], %s1148_s20 }
 0x2c6   : > { %p1525_p12 = pnand %p2168_p9, %p2167_p7 }
 0x2c8   : > { %1729 = dma.done.wait (!%p1525_p12), %s1149_s24, 8192  }
 0x2c9   : > { %1731 = vsyncadd (!%p1525_p12), %s1149_s24, 4294959104  ;;  %p17_p2 = scmp.ge.s32.totalorder %s1888_s4, 4   ;;  %s2169_s12 = smov %s1738_s13 }
 0x2ca   : > { %s2170_s13 = smov %s1742_s14  ;;  %s2171_s14 = smov %s1904_s9 }
 0x2cb   : > { %s2172_s15 = smov %s1888_s4  ;;  %19 = sbr.rel (!%p17_p2) target bundleno = 6 (0x6), region = 85 }
 0x2d2   :  { %1154 = vsyncpa [#allocation3], 1 }
 0x2d3   :  { %1156 = vsyncpa [#allocation3 + $0x1], 1 }
 0x2d4   :  { %1157 = vsyncpa [#allocation6], 1 }
 0x2d5   :  { %1158 = vsyncpa [#allocation4], 1 }
 0x2d6   :  { %1160 = vsyncpa [#allocation4 + $0x1], 1 }

</bundles_post_ra>
